<compile_context>
chip_gen: v6e
topology: v6e:2x2x1
jax: 0.10.0
libtpu: 0.0.40
codegen_flags: <defaults>
</compile_context>

<pallas_src>
import functools
import math

import jax
import jax.numpy as jnp
from jax import lax
from jax.experimental import pallas as pl
from jax.experimental.pallas import tpu as pltpu

EPS = 1e-5
GROWTH = 32                 # growth_rate k
BN_SIZE = 4                 # bottleneck width multiplier
BLOCK_CONFIG = (6, 12, 24, 16)
NUM_INIT_FEATURES = 64
STEM_K = 256                # 7*7*3 = 147 zero-padded to 2*128 (clean MXU K depth)


def _round_up(x, m):
    return ((x + m - 1) // m) * m


def _pad_to(x, axis, target):
    if x.shape[axis] == target:
        return x
    pad = [(0, 0)] * x.ndim
    pad[axis] = (0, target - x.shape[axis])
    return jnp.pad(x, pad)


# --------------------------------------------------------------------------
# Pallas kernels
# --------------------------------------------------------------------------

def _gemm_kernel(*refs, prologue, has_escale, has_eshift, activation):
    """o = act((relu(a*ps+pt) if prologue else a) @ b [* es] [+ et])."""
    it = iter(refs)
    a_ref = next(it)
    b_ref = next(it)
    ps_ref = next(it) if prologue else None
    pt_ref = next(it) if prologue else None
    es_ref = next(it) if has_escale else None
    et_ref = next(it) if has_eshift else None
    o_ref = next(it)

    a = a_ref[...]
    if prologue:
        # BN scale/shift + ReLU prologue, computed in f32 for accuracy.
        a = jnp.maximum(a.astype(jnp.float32) * ps_ref[...] + pt_ref[...], 0.0)
    acc = jnp.dot(a.astype(jnp.bfloat16), b_ref[...],
                  preferred_element_type=jnp.float32)
    if has_escale:
        acc = acc * es_ref[...]
    if has_eshift:
        acc = acc + et_ref[...]
    if activation == "relu":
        acc = jnp.maximum(acc, 0.0)
    elif activation == "sigmoid":
        acc = 0.5 * (jnp.tanh(0.5 * acc) + 1.0)        # numerically-stable sigmoid
    o_ref[...] = acc.astype(o_ref.dtype)


def fused_matmul(a, b, *, pscale=None, pshift=None, escale=None, eshift=None,
                 activation="none", out_dtype=jnp.bfloat16, tm=512):
    """act((relu(a*pscale+pshift) if prologue) @ b [* escale] [+ eshift]).

    a: (M, K) bf16/f32 activations (K carried at its true width).
    b: (K, Np) bf16 weights, Np a multiple of 128 (padded once at init).
    pscale/pshift: (1, K) f32 or None.  escale/eshift: (1, Np) f32 or None
    (the epilogue multiply/add is skipped entirely when None).
    Returns (M, Np) in out_dtype.
    """
    M, K = a.shape
    Kb, Np = b.shape
    assert Kb == K and Np % 128 == 0
    prologue = pscale is not None
    has_escale = escale is not None
    has_eshift = eshift is not None

    # bf16 packs 2 rows per sublane: keep M tiles multiples of 16 and pad M so
    # every grid step sees a full (unragged) tile.
    tm_eff = min(tm, _round_up(max(M, 16), 16))
    Mp = _round_up(max(M, 16), tm_eff)
    if Mp != M:
        a = jnp.pad(a, ((0, Mp - M), (0, 0)))

    # Single N tile (Np <= 512 for every DenseNet121 GEMM): the prologue is
    # computed exactly once per A tile and the B block stays <= 1 MiB bf16.
    tn = Np
    grid = (Mp // tm_eff, Np // tn)

    in_specs = [pl.BlockSpec((tm_eff, K), lambda i, j: (i, 0)),
                pl.BlockSpec((K, tn), lambda i, j: (0, j))]
    args = [a, b]
    if prologue:
        in_specs += [pl.BlockSpec((1, K), lambda i, j: (0, 0)),
                     pl.BlockSpec((1, K), lambda i, j: (0, 0))]
        args += [pscale, pshift]
    if has_escale:
        in_specs.append(pl.BlockSpec((1, tn), lambda i, j: (0, j)))
        args.append(escale)
    if has_eshift:
        in_specs.append(pl.BlockSpec((1, tn), lambda i, j: (0, j)))
        args.append(eshift)

    out = pl.pallas_call(
        functools.partial(_gemm_kernel, prologue=prologue, has_escale=has_escale,
                          has_eshift=has_eshift, activation=activation),
        out_shape=jax.ShapeDtypeStruct((Mp, Np), out_dtype),
        grid_spec=pltpu.PrefetchScalarGridSpec(
            num_scalar_prefetch=0,
            grid=grid,
            in_specs=in_specs,
            out_specs=pl.BlockSpec((tm_eff, tn), lambda i, j: (i, j))),
        compiler_params=pltpu.CompilerParams(
            dimension_semantics=("parallel", "parallel")),
    )(*args)
    return out[:M] if Mp != M else out


def _conv3x3_kernel(x_ref, w_ref, o_ref, *, wp, l_out, tq):
    """Flat-shift 3x3 conv for one sample.

    x_ref: (1, (H+3)*(W+2), Cin) flattened zero-padded image (bf16).
    w_ref: (9*Cin, Co) taps flattened (di, dj, cin)-major (bf16).
    o_ref: (1, H*(W+2), Co) flat output; the 2 trailing columns of each row are
           garbage and are sliced off by the wrapper.
    The 9 taps of output flat position p live at input flat positions
    p + di*(W+2) + dj, so the patch matrix is just a lane-aligned concat of 9
    contiguous row slices -> one K=9*Cin matmul per chunk.
    """
    taps = [di * wp + dj for di in range(3) for dj in range(3)]
    w = w_ref[...]
    nchunk = -(-l_out // tq)                       # static
    for g in range(nchunk):
        s0 = g * tq
        sz = min(tq, l_out - s0)
        lhs = jnp.concatenate(
            [x_ref[0, s0 + off: s0 + off + sz, :] for off in taps], axis=-1)
        acc = jnp.dot(lhs, w, preferred_element_type=jnp.float32)
        o_ref[0, s0:s0 + sz, :] = acc.astype(o_ref.dtype)


def conv3x3(x, w9):
    """3x3 / stride 1 / pad 1 conv.  x: (N,H,W,Cin) bf16, w9: (9*Cin, Co) bf16.

    One grid step per sample: the whole padded image is DMAed once, the 9-tap
    patch matrix is assembled in VMEM (no HBM im2col), and a single deep matmul
    (chunked in VMEM for large images) produces the output.  Returns the first
    GROWTH output channels, shape (N, H, W, GROWTH)."""
    n, h, wdt, c = x.shape
    co = w9.shape[-1]
    wp = wdt + 2
    # zero pad: 1 row top, 2 rows bottom (keeps the flat-shift taps in bounds),
    # 1 column left/right.  Padding is applied AFTER the activation (correct).
    xp = jnp.pad(x, ((0, 0), (1, 2), (1, 1), (0, 0)))
    lp = (h + 3) * wp
    xf = xp.reshape(n, lp, c)                      # free reshape (row-major)
    l_out = h * wp
    tq = min(l_out, 1024)

    out = pl.pallas_call(
        functools.partial(_conv3x3_kernel, wp=wp, l_out=l_out, tq=tq),
        out_shape=jax.ShapeDtypeStruct((n, l_out, co), jnp.bfloat16),
        grid_spec=pltpu.PrefetchScalarGridSpec(
            num_scalar_prefetch=0,
            grid=(n,),
            in_specs=[pl.BlockSpec((1, lp, c), lambda i: (i, 0, 0)),
                      pl.BlockSpec((9 * c, co), lambda i: (0, 0))],
            out_specs=pl.BlockSpec((1, l_out, co), lambda i: (i, 0, 0))),
        compiler_params=pltpu.CompilerParams(dimension_semantics=("parallel",)),
    )(xf, w9)
    # drop the 2 garbage columns per row and the zero-padded output channels.
    return out.reshape(n, h, wp, co)[:, :, :wdt, :GROWTH]


def _bn_relu_pool_kernel(x_ref, s_ref, t_ref, o_ref, *, c, th):
    """2x2 avg-pool of relu(x*s+t).  Input rows come in pre-reshaped as
    (w/2, 2*c) so the horizontal pair is a static lane slice (no strided ops)."""
    s = s_ref[...]
    t = t_ref[...]
    for r in range(th):                            # static row-group loop
        acc = None
        for dh in range(2):
            row = x_ref[0, 2 * r + dh].astype(jnp.float32)     # (w2, 2c)
            for dw in range(2):
                v = jnp.maximum(row[:, dw * c:(dw + 1) * c] * s + t, 0.0)
                acc = v if acc is None else acc + v
        o_ref[0, r] = (acc * 0.25).astype(o_ref.dtype)


def bn_relu_pool2x2(x, scale, shift, *, th_max=8):
    """avg_pool2x2(relu(bn(x))) as one Pallas kernel.

    Because the following transition conv is a linear 1x1, pooling *before*
    the GEMM is exact and makes the GEMM 4x smaller."""
    n, h, w, c = x.shape
    assert h % 2 == 0 and w % 2 == 0, "transition expects even feature maps"
    h2, w2 = h // 2, w // 2
    xr = x.reshape(n, h, w2, 2 * c)                # free: merges (2, c) -> 2c
    th = max(d for d in range(1, min(th_max, h2) + 1) if h2 % d == 0)
    return pl.pallas_call(
        functools.partial(_bn_relu_pool_kernel, c=c, th=th),
        out_shape=jax.ShapeDtypeStruct((n, h2, w2, c), jnp.bfloat16),
        grid_spec=pltpu.PrefetchScalarGridSpec(
            num_scalar_prefetch=0,
            grid=(n, h2 // th),
            in_specs=[pl.BlockSpec((1, 2 * th, w2, 2 * c),
                                   lambda i, j: (i, j, 0, 0)),
                      pl.BlockSpec((1, c), lambda i, j: (0, 0)),
                      pl.BlockSpec((1, c), lambda i, j: (0, 0))],
            out_specs=pl.BlockSpec((1, th, w2, c), lambda i, j: (i, j, 0, 0))),
        compiler_params=pltpu.CompilerParams(
            dimension_semantics=("parallel", "parallel")),
    )(xr, scale, shift)


def _bn_relu_gap_kernel(x_ref, s_ref, t_ref, o_ref):
    x = x_ref[0].astype(jnp.float32)               # (HW, C)
    y = jnp.maximum(x * s_ref[...] + t_ref[...], 0.0)
    o_ref[0] = jnp.mean(y, axis=0, keepdims=True)


def bn_relu_gap(x, scale, shift):
    """relu(norm5(x)) -> adaptive_avg_pool2d((1,1)) -> flatten, per sample."""
    n, h, w, c = x.shape
    hw = h * w
    out = pl.pallas_call(
        _bn_relu_gap_kernel,
        out_shape=jax.ShapeDtypeStruct((n, 1, c), jnp.float32),
        grid_spec=pltpu.PrefetchScalarGridSpec(
            num_scalar_prefetch=0,
            grid=(n,),
            in_specs=[pl.BlockSpec((1, hw, c), lambda i: (i, 0, 0)),
                      pl.BlockSpec((1, c), lambda i: (0, 0)),
                      pl.BlockSpec((1, c), lambda i: (0, 0))],
            out_specs=pl.BlockSpec((1, 1, c), lambda i: (i, 0, 0))),
        compiler_params=pltpu.CompilerParams(dimension_semantics=("parallel",)),
    )(x.reshape(n, hw, c), scale, shift)
    return out.reshape(n, c)


# --------------------------------------------------------------------------
# Stem im2col (one-off, 3 input channels) and max-pool glue
# --------------------------------------------------------------------------

def _im2col(x, kh, kw, stride, pad):
    n, h, w, c = x.shape
    xp = jnp.pad(x, ((0, 0), (pad, pad), (pad, pad), (0, 0)))
    ho = (h + 2 * pad - kh) // stride + 1
    wo = (w + 2 * pad - kw) // stride + 1
    cols = []
    for i in range(kh):
        for j in range(kw):
            cols.append(xp[:, i:i + stride * ho:stride, j:j + stride * wo:stride, :])
    patches = jnp.concatenate(cols, axis=-1)
    return patches.reshape(n * ho * wo, kh * kw * c), ho, wo


def maxpool_3x3_s2_p1(x):
    # matches nn.MaxPool2d(kernel_size=3, stride=2, padding=1)
    # TODO(synk): thin XLA glue; runs once per forward on the stem output.
    return lax.reduce_window(
        x, jnp.array(-jnp.inf, x.dtype), lax.max,
        window_dimensions=(1, 3, 3, 1), window_strides=(1, 2, 2, 1),
        padding=((0, 0), (1, 1), (1, 1), (0, 0)))


# --------------------------------------------------------------------------
# Parameters (deterministic synthetic init, PyTorch layouts) + preparation
# --------------------------------------------------------------------------

class _Init:
    def __init__(self, seed):
        self._key = jax.random.PRNGKey(seed)
        self._i = 0

    def next(self):
        self._i += 1
        return jax.random.fold_in(self._key, self._i)


def _conv_w(rng, out_c, in_c, kh, kw):
    fan_in = in_c * kh * kw
    return jax.random.normal(rng.next(), (out_c, in_c, kh, kw),
                             jnp.float32) * math.sqrt(2.0 / fan_in)


def _bn_p(rng, c):
    return {
        "gamma": 1.0 + 0.1 * jax.random.normal(rng.next(), (c,), jnp.float32),
        "beta": 0.1 * jax.random.normal(rng.next(), (c,), jnp.float32),
        "mean": 0.1 * jax.random.normal(rng.next(), (c,), jnp.float32),
        "var": jnp.ones((c,), jnp.float32),
    }


def init_densenet121_params(out_size, seed=0):
    rng = _Init(seed)
    params = {
        "conv0": _conv_w(rng, NUM_INIT_FEATURES, 3, 7, 7),
        "norm0": _bn_p(rng, NUM_INIT_FEATURES),
        "blocks": [],
        "transitions": [],
    }
    c = NUM_INIT_FEATURES
    for bi, nlayers in enumerate(BLOCK_CONFIG):
        layers = []
        for _ in range(nlayers):
            layers.append({
                "norm1": _bn_p(rng, c),
                "conv1": _conv_w(rng, BN_SIZE * GROWTH, c, 1, 1),
                "norm2": _bn_p(rng, BN_SIZE * GROWTH),
                "conv2": _conv_w(rng, GROWTH, BN_SIZE * GROWTH, 3, 3),
            })
            c += GROWTH
        params["blocks"].append(layers)
        if bi != len(BLOCK_CONFIG) - 1:
            params["transitions"].append({
                "norm": _bn_p(rng, c),
                "conv": _conv_w(rng, c // 2, c, 1, 1),
            })
            c = c // 2
    params["norm5"] = _bn_p(rng, c)  # c == 1024
    bound = 1.0 / math.sqrt(c)
    params["cls_w"] = jax.random.uniform(rng.next(), (out_size, c),
                                         jnp.float32, -bound, bound)
    params["cls_b"] = jax.random.uniform(rng.next(), (out_size,),
                                         jnp.float32, -bound, bound)
    return params


def _fold_bn(p):
    scale = (p["gamma"] / jnp.sqrt(p["var"] + EPS)).astype(jnp.float32)
    shift = (p["beta"] - p["mean"] * scale).astype(jnp.float32)
    return scale, shift


def prepare_params(raw, out_size):
    """Fold BN into scale/shift, cast weights to bf16, pad to 128-lane widths
    (once, at init), flatten 3x3 taps to a (9*Cin, 128) GEMM weight, and
    zero-extend per-layer K params to the block-buffer width."""
    prep = {"blocks": [], "transitions": []}

    w0 = jnp.transpose(raw["conv0"], (2, 3, 1, 0)).reshape(7 * 7 * 3,
                                                           NUM_INIT_FEATURES)
    w0 = _pad_to(w0, 0, STEM_K)                         # K: 147 -> 256
    prep["conv0_w"] = _pad_to(w0, 1, 128).astype(jnp.bfloat16)
    s0, t0 = _fold_bn(raw["norm0"])
    prep["conv0_es"] = _pad_to(s0[None, :], 1, 128)
    prep["conv0_et"] = _pad_to(t0[None, :], 1, 128)

    c_in = NUM_INIT_FEATURES
    for bi, nlayers in enumerate(BLOCK_CONFIG):
        c_blk = c_in + nlayers * GROWTH
        layers = []
        for li in range(nlayers):
            rl = raw["blocks"][bi][li]
            c_l = c_in + li * GROWTH
            s1, t1 = _fold_bn(rl["norm1"])                       # (c_l,)
            w1 = rl["conv1"].reshape(BN_SIZE * GROWTH, c_l).T    # (c_l, 128)
            s2, t2 = _fold_bn(rl["norm2"])                       # (128,)
            w2 = jnp.transpose(rl["conv2"], (2, 3, 1, 0))        # (3,3,128,32)
            w9 = _pad_to(w2, 3, 128).reshape(9 * BN_SIZE * GROWTH, 128)
            layers.append({
                # norm1 prologue, zero-extended to the block buffer width so
                # not-yet-written channels contribute exactly zero.
                "ps1": _pad_to(s1[None, :], 1, c_blk),
                "pt1": _pad_to(t1[None, :], 1, c_blk),
                "w1": _pad_to(w1, 0, c_blk).astype(jnp.bfloat16),
                # norm2+relu fused as epilogue of the 1x1 bottleneck GEMM.
                "es2": s2[None, :],
                "et2": t2[None, :],
                # 3x3 taps flattened (di, dj, cin)-major for the one-matmul kernel.
                "w9": w9.astype(jnp.bfloat16),
            })
        prep["blocks"].append(layers)
        if bi != len(BLOCK_CONFIG) - 1:
            rt = raw["transitions"][bi]
            st, tt = _fold_bn(rt["norm"])
            prep["transitions"].append({
                "ps": st[None, :],
                "pt": tt[None, :],
                "w": rt["conv"].reshape(c_blk // 2, c_blk).T.astype(jnp.bfloat16),
            })
            c_in = c_blk // 2
        else:
            c_in = c_blk

    s5, t5 = _fold_bn(raw["norm5"])
    prep["norm5_s"] = s5[None, :]
    prep["norm5_t"] = t5[None, :]
    np_cls = _round_up(out_size, 128)
    prep["cls_w"] = _pad_to(raw["cls_w"].T, 1, np_cls).astype(jnp.bfloat16)
    prep["cls_b"] = _pad_to(raw["cls_b"][None, :], 1, np_cls)
    return prep


# --------------------------------------------------------------------------
# Forward pass (matches torchvision DenseNet.forward + custom classifier head)
# --------------------------------------------------------------------------

def densenet121_forward(prep, x_nchw, out_size):
    x = jnp.transpose(x_nchw, (0, 2, 3, 1)).astype(jnp.bfloat16)  # NCHW -> NHWC
    n = x.shape[0]

    # Stem: conv0 (7x7 s2 p3) as one GEMM with norm0+relu epilogue (K padded to
    # 256 for an unmasked MXU contraction), then 3x3/s2 max-pool.
    patches, ho, wo = _im2col(x, 7, 7, stride=2, pad=3)
    patches = _pad_to(patches, 1, STEM_K)
    y = fused_matmul(patches, prep["conv0_w"],
                     escale=prep["conv0_es"], eshift=prep["conv0_et"],
                     activation="relu")
    y = y[:, :NUM_INIT_FEATURES].reshape(n, ho, wo, NUM_INIT_FEATURES)
    feat = maxpool_3x3_s2_p1(y)

    c_in = NUM_INIT_FEATURES
    for bi, nlayers in enumerate(BLOCK_CONFIG):
        _, h, w, _ = feat.shape
        c_blk = c_in + nlayers * GROWTH
        # Block-wide channel buffer (multiple of 128): features are appended in
        # place via dynamic_update_slice instead of per-layer concatenates.
        # TODO(synk): 32-channel offsets are not 128-lane aligned, so the write
        # stays an XLA DUS rather than an aliased in-kernel store.
        buf = jnp.zeros((n, h, w, c_blk), jnp.bfloat16).at[..., :c_in].set(feat)
        for li in range(nlayers):
            lp = prep["blocks"][bi][li]
            # 1x1 bottleneck: relu(norm2(conv1(relu(norm1(features))))) fused
            # into a single GEMM (prologue + epilogue), single N tile.
            bott = fused_matmul(buf.reshape(n * h * w, c_blk), lp["w1"],
                                pscale=lp["ps1"], pshift=lp["pt1"],
                                escale=lp["es2"], eshift=lp["et2"],
                                activation="relu")
            bott = bott.reshape(n, h, w, BN_SIZE * GROWTH)
            # 3x3 conv: one deep (K=1152) matmul per sample, patches built in VMEM.
            new = conv3x3(bott, lp["w9"])                       # (n, h, w, 32)
            off = c_in + li * GROWTH
            buf = buf.at[..., off:off + GROWTH].set(new)
        feat = buf
        if bi != len(BLOCK_CONFIG) - 1:
            tp = prep["transitions"][bi]
            # Transition: avgpool2x2(conv(relu(norm(x)))) == conv(avgpool2x2(
            # relu(norm(x)))) because the 1x1 conv is linear -> pool first in a
            # fused Pallas kernel, then a 4x-smaller GEMM with no epilogue.
            pooled = bn_relu_pool2x2(feat, tp["ps"], tp["pt"])  # (n, h/2, w/2, c_blk)
            h2, w2 = h // 2, w // 2
            t = fused_matmul(pooled.reshape(n * h2 * w2, c_blk), tp["w"])
            feat = t.reshape(n, h2, w2, c_blk // 2)
            c_in = c_blk // 2
        else:
            c_in = c_blk

    # Head: norm5 + relu + global average pool fused, then Linear + Sigmoid
    # fused into the classifier GEMM epilogue.
    pooled = bn_relu_gap(feat, prep["norm5_s"], prep["norm5_t"])   # (N, 1024) f32
    logits = fused_matmul(pooled, prep["cls_w"], eshift=prep["cls_b"],
                          activation="sigmoid", out_dtype=jnp.float32)
    return logits[:, :out_size]                                    # (N, out_size)


if __name__ == "__main__":
    OUT_SIZE = 14
    key = jax.random.PRNGKey(0)
    x = jax.random.normal(key, (2, 3, 32, 32), jnp.float32)  # NCHW like PyTorch

    raw = init_densenet121_params(OUT_SIZE, seed=0)
    prep = prepare_params(raw, OUT_SIZE)

    y = densenet121_forward(prep, x, OUT_SIZE)
    y = jax.block_until_ready(y)

    assert y.shape == (2, OUT_SIZE), y.shape
    assert bool(jnp.all(jnp.isfinite(y)))
    assert bool(jnp.all((y >= 0.0) & (y <= 1.0)))
    print("KERNEL_OK")
</pallas_src>

<mosaic_0001>
module attributes {stable_mosaic.version = 11 : i64} {
  func.func @_gemm_kernel(%arg0: i32, %arg1: i32, %arg2: memref<512x256xbf16, #tpu.memory_space<vmem>>, %arg3: memref<256x128xbf16, #tpu.memory_space<vmem>>, %arg4: memref<1x128xf32, #tpu.memory_space<vmem>>, %arg5: memref<1x128xf32, #tpu.memory_space<vmem>>, %arg6: memref<512x128xbf16, #tpu.memory_space<vmem>>) attributes {dimension_semantics = [#tpu.dimension_semantics<parallel>, #tpu.dimension_semantics<parallel>], iteration_bounds = array<i64: 1, 1>, scalar_prefetch = 0 : i64, scratch_operands = 0 : i64, tpu.core_type = #tpu.core_type<tc>, window_params = [{transform_indices = @transform_0, window_bounds = array<i64: 512, 256>}, {transform_indices = @transform_1, window_bounds = array<i64: 256, 128>}, {transform_indices = @transform_2, window_bounds = array<i64: 1, 128>}, {transform_indices = @transform_3, window_bounds = array<i64: 1, 128>}, {transform_indices = @transform_4, window_bounds = array<i64: 512, 128>}]} {
    %c0 = arith.constant 0 : index
    %c0_0 = arith.constant 0 : index
    %0 = vector.load %arg2[%c0, %c0_0] : memref<512x256xbf16, #tpu.memory_space<vmem>>, vector<512x256xbf16>
    %c0_1 = arith.constant 0 : index
    %c0_2 = arith.constant 0 : index
    %1 = vector.load %arg3[%c0_1, %c0_2] : memref<256x128xbf16, #tpu.memory_space<vmem>>, vector<256x128xbf16>
    %cst = arith.constant dense<0.000000e+00> : vector<512x128xf32>
    %2 = tpu.matmul %0, %1, %cst {dimension_numbers = #tpu.dot_dimension_numbers<[1], [0], [0], [1], [0, 0, 1, 1], [], []>} : vector<512x256xbf16>, vector<256x128xbf16>, vector<512x128xf32> -> vector<512x128xf32>
    %c0_3 = arith.constant 0 : index
    %c0_4 = arith.constant 0 : index
    %3 = vector.load %arg4[%c0_3, %c0_4] : memref<1x128xf32, #tpu.memory_space<vmem>>, vector<1x128xf32>
    %4 = vector.broadcast %3 : vector<1x128xf32> to vector<512x128xf32>
    %5 = arith.mulf %2, %4 : vector<512x128xf32>
    %c0_5 = arith.constant 0 : index
    %c0_6 = arith.constant 0 : index
    %6 = vector.load %arg5[%c0_5, %c0_6] : memref<1x128xf32, #tpu.memory_space<vmem>>, vector<1x128xf32>
    %7 = vector.broadcast %6 : vector<1x128xf32> to vector<512x128xf32>
    %8 = arith.addf %5, %7 : vector<512x128xf32>
    %cst_7 = arith.constant 0.000000e+00 : f32
    %9 = vector.broadcast %cst_7 : f32 to vector<512x128xf32>
    %10 = arith.maximumf %8, %9 : vector<512x128xf32>
    %11 = arith.truncf %10 : vector<512x128xf32> to vector<512x128xbf16>
    %c0_8 = arith.constant 0 : index
    %c0_9 = arith.constant 0 : index
    %12 = vector.load %arg6[%c0_8, %c0_9] : memref<512x128xbf16, #tpu.memory_space<vmem>>, vector<512x128xbf16>
    tpu.vector_store %arg6[%c0_8, %c0_9], %11 {strides = array<i32>} : memref<512x128xbf16, #tpu.memory_space<vmem>>, vector<512x128xbf16>,
    return
  }
  func.func @transform_0(%arg0: i32, %arg1: i32) -> (i32, i32) {
    %c0_i32 = arith.constant 0 : i32
    %c0_i32_0 = arith.constant 0 : i32
    return %arg0, %c0_i32 : i32, i32
  }
  func.func @transform_1(%arg0: i32, %arg1: i32) -> (i32, i32) {
    %c0_i32 = arith.constant 0 : i32
    %c0_i32_0 = arith.constant 0 : i32
    return %c0_i32, %arg1 : i32, i32
  }
  func.func @transform_2(%arg0: i32, %arg1: i32) -> (i32, i32) {
    %c0_i32 = arith.constant 0 : i32
    %c0_i32_0 = arith.constant 0 : i32
    return %c0_i32, %arg1 : i32, i32
  }
  func.func @transform_3(%arg0: i32, %arg1: i32) -> (i32, i32) {
    %c0_i32 = arith.constant 0 : i32
    %c0_i32_0 = arith.constant 0 : i32
    return %c0_i32, %arg1 : i32, i32
  }
  func.func @transform_4(%arg0: i32, %arg1: i32) -> (i32, i32) {
    %c0_i32 = arith.constant 0 : i32
    return %arg0, %arg1 : i32, i32
  }
}

</mosaic_0001>

<bundles_post_ra>
// kernel: tpu_custom_call.1
= control target key start
LH: loop header
LB: loop body
LE: loop exit
PB: predicated region body
PF: predicated region fallthrough
CT: control target
= control target key end

     0   :  { %9 = vsyncpa [#allocation3], 0  ;;  %s2229_s0 = inlined_call_operand.hbm [shape: bf16[512,256], index: 0, kind: input, shape index: {}]   ;;  %s2230_s1 = inlined_call_operand.hbm [shape: bf16[256,128], index: 1, kind: input, shape index: {}]   ;;  %s2231_s2 = inlined_call_operand.vmem [shape: f32[1,128], index: 2, kind: input, shape index: {}]   ;;  %s2232_s3 = inlined_call_operand.vmem [shape: f32[1,128], index: 3, kind: input, shape index: {}]   ;;  %s2233_s4 = inlined_call_operand.hbm [shape: bf16[512,128], index: 4, kind: output, shape index: {}]  }
   0x1   :  { %10 = vsyncpa [#allocation6], 0 }
   0x2   :  { %11 = vsyncpa [#allocation4], 0  ;;  %s2011_s15 = smov [#allocation2]  }
   0x3   :  { %s17_s16 = sshll.u32 %s2011_s15, 4  ;;  %s18_s16 = int_to_ptr.vmem [resolvable:$true] %s17_s16 }
   0x4   :  { %s1953_s17 = scalar_lea.vmem %s18_s16, 8192  ;;  %p1958_p1 = scmp.lt.s32.totalorder %s18_s16, %s18_s16 }
   0x5   :  { %p1954_p0 = scmp.ne.s32.totalorder %s18_s16, %s1953_s17  ;;  %p1959_p2 = scmp.lt.s32.totalorder %s1953_s17, %s1953_s17 }
   0x7   :  { %p1960_p3 = por %p1959_p2, %p1958_p1 }
   0x9   :  { %p1961_p4 = pnand %p1960_p3, %p1954_p0 }
   0xb   :  { %1964 = shalt.err (!%p1961_p4)
}
   0xc   :  { %s2012_s18 = smov 128   ;;  %s2013_s19 = smov 8  }
   0xd   :  { %23 = dma.hbm_to_vmem [thread:$0]  %s2229_s0, 8192, %s18_s16, [#allocation3], %s2012_s18, %s2012_s18, %s2013_s19  }
   0xe   :  { %s2014_s22 = smov [#allocation5]  }
   0xf   :  { %s29_s23 = sshll.u32 %s2014_s22, 4  ;;  %s30_s23 = int_to_ptr.vmem [resolvable:$true] %s29_s23 }
  0x10   :  { %s1973_s24 = scalar_lea.vmem %s30_s23, 2048  ;;  %p1978_p6 = scmp.lt.s32.totalorder %s30_s23, %s30_s23 }
  0x11   :  { %p1974_p5 = scmp.ne.s32.totalorder %s30_s23, %s1973_s24  ;;  %p1979_p7 = scmp.lt.s32.totalorder %s1973_s24, %s1973_s24 }
  0x13   :  { %p1980_p8 = por %p1979_p7, %p1978_p6 }
  0x15   :  { %p1981_p9 = pnand %p1980_p8, %p1974_p5 }
  0x17   :  { %1984 = shalt.err (!%p1981_p9)
}
  0x18   :  { %s2015_s25 = smov 64   ;;  %s2016_s26 = smov 4  }
  0x19   :  { %35 = dma.hbm_to_vmem [thread:$0]  %s2230_s1, 2048, %s30_s23, [#allocation6], %s2015_s25, %s2015_s25, %s2016_s26  }
  0x1a   :  { %2005 = dma.done.wait [#allocation3], 8192  }
  0x1b   :  { %2006 = vsyncadd [#allocation3], 4294959104 }
  0x1c   :  { %2007 = dma.done.wait [#allocation6], 2048  }
  0x1d   :  { %2008 = vsyncadd [#allocation6], 4294965248  ;;  %v2017_v0 = vmov 0   ;;  %v1833_v1 = vld [vmem:[#allocation5 + $0x38] sm:$0xff]   ;;  %v1834_v2 = vld [vmem:[#allocation5 + $0x30] sm:$0xff]  }
  0x1e   :  { %559 = vmatprep.subr.bf16.mxu0 %v2017_v0  ;;  %1793 = vmatprep.subr.bf16.mxu1 %v2017_v0  ;;  %v1835_v3 = vld [vmem:[#allocation5 + $0x28] sm:$0xff]   ;;  %v1836_v4 = vld [vmem:[#allocation5 + $0x20] sm:$0xff]   ;;  %v1837_v5 = vld [vmem:[#allocation5 + $0x18] sm:$0xff]  }
  0x1f   :  { %560 = vmatpush1.bf16.msra.mxu0 %v1833_v1  ;;  %1809 = vmatpush1.bf16.msra.mxu1 %v1833_v1  ;;  %v1851_v6 = vld [vmem:[#allocation2 + $0x4] ss:$8 sps:$4 sm:$0xff]   ;;  %v1838_v7 = vld [vmem:[#allocation5 + $0x10] sm:$0xff]   ;;  %v1841_v11 = vld [vmem:[#allocation5 + $0x78] sm:$0xff]  }
  0x20   :  { %561 = vmatprep.subr.bf16.mxu0 %v2017_v0  ;;  %1794 = vmatprep.subr.bf16.mxu1 %v2017_v0  ;;  %v1854_v8 = vld [vmem:[#allocation2 + $0x104] ss:$8 sps:$4 sm:$0xff]   ;;  %v1842_v12 = vld [vmem:[#allocation5 + $0x70] sm:$0xff]   ;;  %v1845_v15 = vld [vmem:[#allocation5 + $0x58] sm:$0xff]  }
  0x21   :  { %591 = vmatprep.mubr.bf16.mxu0 %v1851_v6  ;;  %719 = vmatprep.mubr.bf16.mxu1 %v1854_v8  ;;  %v1839_v9 = vld [vmem:[#allocation5 + $0x8] sm:$0xff]   ;;  %v1840_v10 = vld [vmem:[#allocation5] sm:$0xff]   ;;  %v1846_v16 = vld [vmem:[#allocation5 + $0x50] sm:$0xff]  }
  0x22   :  { %v1843_v13 = vld [vmem:[#allocation5 + $0x68] sm:$0xff]   ;;  %v1844_v14 = vld [vmem:[#allocation5 + $0x60] sm:$0xff]   ;;  %v1855_v21 = vld [vmem:[#allocation2 + $0x14] ss:$8 sps:$4 sm:$0xff]  }
  0x23   :  { %562 = vmatpush1.bf16.msra.mxu0 %v1834_v2  ;;  %1810 = vmatpush1.bf16.msra.mxu1 %v1834_v2  ;;  %v1847_v17 = vld [vmem:[#allocation5 + $0x48] sm:$0xff]   ;;  %v1848_v18 = vld [vmem:[#allocation5 + $0x40] sm:$0xff]   ;;  %v1857_v22 = vld [vmem:[#allocation2 + $0x114] ss:$8 sps:$4 sm:$0xff]  }
  0x24   :  { %563 = vmatprep.subr.bf16.mxu0 %v2017_v0  ;;  %1795 = vmatprep.subr.bf16.mxu1 %v2017_v0  ;;  %v1849_v19 = vld [vmem:[#allocation2] ss:$8 sps:$4 sm:$0xff]   ;;  %v1859_v23 = vld [vmem:[#allocation2 + $0x10] ss:$8 sps:$4 sm:$0xff]   ;;  %v1861_v25 = vld [vmem:[#allocation2 + $0x24] ss:$8 sps:$4 sm:$0xff]  }
  0x25   :  { %v1852_v20 = vld [vmem:[#allocation2 + $0x100] ss:$8 sps:$4 sm:$0xff]   ;;  %v1860_v24 = vld [vmem:[#allocation2 + $0x110] ss:$8 sps:$4 sm:$0xff]   ;;  %v1863_v26 = vld [vmem:[#allocation2 + $0x124] ss:$8 sps:$4 sm:$0xff]  }
  0x26   :  { %v1865_v27 = vld [vmem:[#allocation2 + $0x20] ss:$8 sps:$4 sm:$0xff]   ;;  %v1867_v29 = vld [vmem:[#allocation2 + $0x34] ss:$8 sps:$4 sm:$0xff]   ;;  %v1871_v31 = vld [vmem:[#allocation2 + $0x30] ss:$8 sps:$4 sm:$0xff]  }
  0x27   :  { %564 = vmatpush1.bf16.msra.mxu0 %v1835_v3  ;;  %1811 = vmatpush1.bf16.msra.mxu1 %v1835_v3  ;;  %v1866_v28 = vld [vmem:[#allocation2 + $0x120] ss:$8 sps:$4 sm:$0xff]   ;;  %v1869_v30 = vld [vmem:[#allocation2 + $0x134] ss:$8 sps:$4 sm:$0xff]   ;;  %v1872_v32 = vld [vmem:[#allocation2 + $0x130] ss:$8 sps:$4 sm:$0xff]  }
  0x28   :  { %565 = vmatprep.subr.bf16.mxu0 %v2017_v0  ;;  %1796 = vmatprep.subr.bf16.mxu1 %v2017_v0  ;;  %v1873_v33 = vld [vmem:[#allocation2 + $0x44] ss:$8 sps:$4 sm:$0xff]   ;;  %v1877_v35 = vld [vmem:[#allocation2 + $0x40] ss:$8 sps:$4 sm:$0xff]   ;;  %v1879_v37 = vld [vmem:[#allocation2 + $0x54] ss:$8 sps:$4 sm:$0xff]  }
  0x29   :  { %v1875_v34 = vld [vmem:[#allocation2 + $0x144] ss:$8 sps:$4 sm:$0xff]   ;;  %v1878_v36 = vld [vmem:[#allocation2 + $0x140] ss:$8 sps:$4 sm:$0xff]   ;;  %v1881_v38 = vld [vmem:[#allocation2 + $0x154] ss:$8 sps:$4 sm:$0xff]  }
  0x2a   :  { %v1883_v39 = vld [vmem:[#allocation2 + $0x50] ss:$8 sps:$4 sm:$0xff]   ;;  %v1885_v41 = vld [vmem:[#allocation2 + $0x64] ss:$8 sps:$4 sm:$0xff]   ;;  %v1889_v43 = vld [vmem:[#allocation2 + $0x60] ss:$8 sps:$4 sm:$0xff]  }
  0x2b   :  { %566 = vmatpush1.bf16.msra.mxu0 %v1836_v4  ;;  %1812 = vmatpush1.bf16.msra.mxu1 %v1836_v4  ;;  %v1884_v40 = vld [vmem:[#allocation2 + $0x150] ss:$8 sps:$4 sm:$0xff]   ;;  %v1887_v42 = vld [vmem:[#allocation2 + $0x164] ss:$8 sps:$4 sm:$0xff]   ;;  %v1890_v44 = vld [vmem:[#allocation2 + $0x160] ss:$8 sps:$4 sm:$0xff]  }
  0x2c   :  { %567 = vmatprep.subr.bf16.mxu0 %v2017_v0  ;;  %1797 = vmatprep.subr.bf16.mxu1 %v2017_v0  ;;  %v1891_v45 = vld [vmem:[#allocation2 + $0x74] ss:$8 sps:$4 sm:$0xff]   ;;  %v1895_v47 = vld [vmem:[#allocation2 + $0x70] ss:$8 sps:$4 sm:$0xff]   ;;  %v1897_v49 = vld [vmem:[#allocation2 + $0x84] ss:$8 sps:$4 sm:$0xff]  }
  0x2d   :  { %v1893_v46 = vld [vmem:[#allocation2 + $0x174] ss:$8 sps:$4 sm:$0xff]   ;;  %v1896_v48 = vld [vmem:[#allocation2 + $0x170] ss:$8 sps:$4 sm:$0xff]   ;;  %v1899_v50 = vld [vmem:[#allocation2 + $0x184] ss:$8 sps:$4 sm:$0xff]  }
  0x2e   :  { %v1901_v51 = vld [vmem:[#allocation2 + $0x80] ss:$8 sps:$4 sm:$0xff]   ;;  %v1903_v53 = vld [vmem:[#allocation2 + $0x94] ss:$8 sps:$4 sm:$0xff]   ;;  %v1907_v55 = vld [vmem:[#allocation2 + $0x90] ss:$8 sps:$4 sm:$0xff]  }
  0x2f   :  { %568 = vmatpush1.bf16.msra.mxu0 %v1837_v5  ;;  %1813 = vmatpush1.bf16.msra.mxu1 %v1837_v5  ;;  %v1902_v52 = vld [vmem:[#allocation2 + $0x180] ss:$8 sps:$4 sm:$0xff]   ;;  %v1905_v54 = vld [vmem:[#allocation2 + $0x194] ss:$8 sps:$4 sm:$0xff]   ;;  %v1908_v56 = vld [vmem:[#allocation2 + $0x190] ss:$8 sps:$4 sm:$0xff]  }
  0x30   :  { %569 = vmatprep.subr.bf16.mxu0 %v2017_v0  ;;  %1798 = vmatprep.subr.bf16.mxu1 %v2017_v0  ;;  %v1909_v57 = vld [vmem:[#allocation2 + $0xa4] ss:$8 sps:$4 sm:$0xff]   ;;  %v1913_v59 = vld [vmem:[#allocation2 + $0xa0] ss:$8 sps:$4 sm:$0xff]   ;;  %v1915_v61 = vld [vmem:[#allocation2 + $0xb4] ss:$8 sps:$4 sm:$0xff]  }
  0x31   :  { %v1911_v58 = vld [vmem:[#allocation2 + $0x1a4] ss:$8 sps:$4 sm:$0xff]   ;;  %v1914_v60 = vld [vmem:[#allocation2 + $0x1a0] ss:$8 sps:$4 sm:$0xff]   ;;  %v1917_v62 = vld [vmem:[#allocation2 + $0x1b4] ss:$8 sps:$4 sm:$0xff]  }
  0x32   :  { %v1919_v63 = vld [vmem:[#allocation2 + $0xb0] ss:$8 sps:$4 sm:$0xff]   ;;  %v1921_v1 = vld [vmem:[#allocation2 + $0xc4] ss:$8 sps:$4 sm:$0xff]   ;;  %v1925_v3 = vld [vmem:[#allocation2 + $0xc0] ss:$8 sps:$4 sm:$0xff]  }
  0x33   :  { %570 = vmatpush1.bf16.msra.mxu0 %v1838_v7  ;;  %1814 = vmatpush1.bf16.msra.mxu1 %v1838_v7  ;;  %v1923_v2 = vld [vmem:[#allocation2 + $0x1c4] ss:$8 sps:$4 sm:$0xff]   ;;  %v1926_v4 = vld [vmem:[#allocation2 + $0x1c0] ss:$8 sps:$4 sm:$0xff]   ;;  %v1927_v5 = vld [vmem:[#allocation2 + $0xd4] ss:$8 sps:$4 sm:$0xff]  }
  0x34   :  { %571 = vmatprep.subr.bf16.mxu0 %v2017_v0  ;;  %1799 = vmatprep.subr.bf16.mxu1 %v2017_v0  ;;  %v1929_v6 = vld [vmem:[#allocation2 + $0x1d4] ss:$8 sps:$4 sm:$0xff]   ;;  %v1931_v7 = vld [vmem:[#allocation2 + $0xd0] ss:$8 sps:$4 sm:$0xff]  }
  0x35   :  { %v1932_v8 = vld [vmem:[#allocation2 + $0x1d0] ss:$8 sps:$4 sm:$0xff]  }
  0x37   :  { %572 = vmatpush1.bf16.msra.mxu0 %v1839_v9  ;;  %1815 = vmatpush1.bf16.msra.mxu1 %v1839_v9  ;;  %v1933_v9 = vld [vmem:[#allocation2 + $0xe4] ss:$8 sps:$4 sm:$0xff]  }
  0x38   :  { %573 = vmatprep.subr.bf16.mxu0 %v2017_v0  ;;  %1800 = vmatprep.subr.bf16.mxu1 %v2017_v0 }
  0x3b   :  { %574 = vmatpush1.bf16.msra.mxu0 %v1840_v10  ;;  %1816 = vmatpush1.bf16.msra.mxu1 %v1840_v10  ;;  %v1935_v10 = vld [vmem:[#allocation2 + $0x1e4] ss:$8 sps:$4 sm:$0xff]  }
  0x3c   :  { %575 = vmatprep.subr.bf16.mxu0 %v2017_v0  ;;  %1801 = vmatprep.subr.bf16.mxu1 %v2017_v0 }
  0x3f   :  { %576 = vmatpush2.bf16.msra.mxu0 %v1841_v11  ;;  %1817 = vmatpush2.bf16.msra.mxu1 %v1841_v11  ;;  %v1937_v11 = vld [vmem:[#allocation2 + $0xe0] ss:$8 sps:$4 sm:$0xff]  }
  0x40   :  { %577 = vmatprep.subr.bf16.mxu0 %v2017_v0  ;;  %1802 = vmatprep.subr.bf16.mxu1 %v2017_v0 }
  0x43   :  { %578 = vmatpush2.bf16.msra.mxu0 %v1842_v12  ;;  %1818 = vmatpush2.bf16.msra.mxu1 %v1842_v12  ;;  %v1938_v12 = vld [vmem:[#allocation2 + $0x1e0] ss:$8 sps:$4 sm:$0xff]  }
  0x44   :  { %579 = vmatprep.subr.bf16.mxu0 %v2017_v0  ;;  %1803 = vmatprep.subr.bf16.mxu1 %v2017_v0 }
  0x47   :  { %580 = vmatpush2.bf16.msra.mxu0 %v1843_v13  ;;  %1819 = vmatpush2.bf16.msra.mxu1 %v1843_v13  ;;  %v1939_v13 = vld [vmem:[#allocation2 + $0xf4] ss:$8 sps:$4 sm:$0xff]  }
  0x48   :  { %581 = vmatprep.subr.bf16.mxu0 %v2017_v0  ;;  %1804 = vmatprep.subr.bf16.mxu1 %v2017_v0 }
  0x4b   :  { %582 = vmatpush2.bf16.msra.mxu0 %v1844_v14  ;;  %1820 = vmatpush2.bf16.msra.mxu1 %v1844_v14  ;;  %v1941_v14 = vld [vmem:[#allocation2 + $0x1f4] ss:$8 sps:$4 sm:$0xff]  }
  0x4c   :  { %583 = vmatprep.subr.bf16.mxu0 %v2017_v0  ;;  %1805 = vmatprep.subr.bf16.mxu1 %v2017_v0 }
  0x4f   :  { %584 = vmatpush2.bf16.msra.mxu0 %v1845_v15  ;;  %1821 = vmatpush2.bf16.msra.mxu1 %v1845_v15  ;;  %v1943_v15 = vld [vmem:[#allocation2 + $0xf0] ss:$8 sps:$4 sm:$0xff]  }
  0x50   :  { %585 = vmatprep.subr.bf16.mxu0 %v2017_v0  ;;  %1806 = vmatprep.subr.bf16.mxu1 %v2017_v0 }
  0x53   :  { %586 = vmatpush2.bf16.msra.mxu0 %v1846_v16  ;;  %1822 = vmatpush2.bf16.msra.mxu1 %v1846_v16  ;;  %v1944_v16 = vld [vmem:[#allocation2 + $0x1f0] ss:$8 sps:$4 sm:$0xff]  }
  0x54   :  { %587 = vmatprep.subr.bf16.mxu0 %v2017_v0  ;;  %1807 = vmatprep.subr.bf16.mxu1 %v2017_v0 }
  0x57   :  { %588 = vmatpush2.bf16.msra.mxu0 %v1847_v17  ;;  %1823 = vmatpush2.bf16.msra.mxu1 %v1847_v17  ;;  %v2088_v17 = vld [vmem:[%s2231_s2] ss:$0 sm:$0xff]  ;;  %s2018_s2 = smov [#allocation7]  }
  0x58   :  { %589 = vmatprep.subr.bf16.mxu0 %v2017_v0  ;;  %1808 = vmatprep.subr.bf16.mxu1 %v2017_v0  ;;  %v1920_v0 = vld [vmem:[#allocation2 + $0x1b0] ss:$8 sps:$4 sm:$0xff]  }
  0x5b   :  { %590 = vmatpush2.bf16.msra.mxu0 %v1848_v18  ;;  %1824 = vmatpush2.bf16.msra.mxu1 %v1848_v18 }
  0x5e   :  { %592 = vmatmul.mubr.bf16.vlgmr.msra.gmra.mxu0 %v1849_v19  ;;  %720 = vmatmul.mubr.bf16.vlgmr.msra.gmra.mxu1 %v1852_v20 }
  0x5f   :  { %599 = vmatprep.mubr.bf16.mxu0 %v1855_v21  ;;  %727 = vmatprep.mubr.bf16.mxu1 %v1857_v22  ;;  %v2094_v21 = vld [vmem:[%s2232_s3] ss:$0 sm:$0xff]  ;;  %s1379_s3 = sshll.u32 %s2018_s2, 4  ;;  %s1380_s3 = int_to_ptr.vmem [resolvable:$true] %s1379_s3 }
  0x60   :  { %s1985_s5 = scalar_lea.vmem %s1380_s3, 4096  ;;  %p1990_p11 = scmp.lt.s32.totalorder %s1380_s3, %s1380_s3 }
  0x61   :  { %p1986_p10 = scmp.ne.s32.totalorder %s1380_s3, %s1985_s5  ;;  %p1991_p12 = scmp.lt.s32.totalorder %s1985_s5, %s1985_s5 }
  0x63   :  { %p1992_p13 = por %p1991_p12, %p1990_p11 }
  0x65   :  { %p1993_p0 = pnand %p1992_p13, %p1986_p10 }
  0x66   :  { %600 = vmatmul.mubr.bf16.gmra.mxu0 %v1859_v23  ;;  %728 = vmatmul.mubr.bf16.gmra.mxu1 %v1860_v24 }
  0x67   :  { %607 = vmatprep.mubr.bf16.mxu0 %v1861_v25  ;;  %735 = vmatprep.mubr.bf16.mxu1 %v1863_v26 }
  0x6e   :  { %608 = vmatmul.mubr.bf16.gmra.mxu0 %v1865_v27  ;;  %736 = vmatmul.mubr.bf16.gmra.mxu1 %v1866_v28 }
  0x6f   :  { %615 = vmatprep.mubr.bf16.mxu0 %v1867_v29  ;;  %743 = vmatprep.mubr.bf16.mxu1 %v1869_v30 }
  0x76   :  { %616 = vmatmul.mubr.bf16.gmra.mxu0 %v1871_v31  ;;  %744 = vmatmul.mubr.bf16.gmra.mxu1 %v1872_v32 }
  0x77   :  { %623 = vmatprep.mubr.bf16.mxu0 %v1873_v33  ;;  %751 = vmatprep.mubr.bf16.mxu1 %v1875_v34 }
  0x7e   :  { %624 = vmatmul.mubr.bf16.gmra.mxu0 %v1877_v35  ;;  %752 = vmatmul.mubr.bf16.gmra.mxu1 %v1878_v36 }
  0x7f   :  { %631 = vmatprep.mubr.bf16.mxu0 %v1879_v37  ;;  %759 = vmatprep.mubr.bf16.mxu1 %v1881_v38 }
  0x86   :  { %632 = vmatmul.mubr.bf16.gmra.mxu0 %v1883_v39  ;;  %760 = vmatmul.mubr.bf16.gmra.mxu1 %v1884_v40 }
  0x87   :  { %639 = vmatprep.mubr.bf16.mxu0 %v1885_v41  ;;  %767 = vmatprep.mubr.bf16.mxu1 %v1887_v42 }
  0x8e   :  { %640 = vmatmul.mubr.bf16.gmra.mxu0 %v1889_v43  ;;  %768 = vmatmul.mubr.bf16.gmra.mxu1 %v1890_v44 }
  0x8f   :  { %647 = vmatprep.mubr.bf16.mxu0 %v1891_v45  ;;  %775 = vmatprep.mubr.bf16.mxu1 %v1893_v46 }
  0x96   :  { %648 = vmatmul.mubr.bf16.gmra.mxu0 %v1895_v47  ;;  %776 = vmatmul.mubr.bf16.gmra.mxu1 %v1896_v48 }
  0x97   :  { %655 = vmatprep.mubr.bf16.mxu0 %v1897_v49  ;;  %783 = vmatprep.mubr.bf16.mxu1 %v1899_v50 }
  0x9e   :  { %656 = vmatmul.mubr.bf16.gmra.mxu0 %v1901_v51  ;;  %784 = vmatmul.mubr.bf16.gmra.mxu1 %v1902_v52 }
  0x9f   :  { %663 = vmatprep.mubr.bf16.mxu0 %v1903_v53  ;;  %791 = vmatprep.mubr.bf16.mxu1 %v1905_v54 }
  0xa6   :  { %664 = vmatmul.mubr.bf16.gmra.mxu0 %v1907_v55  ;;  %792 = vmatmul.mubr.bf16.gmra.mxu1 %v1908_v56 }
  0xa7   :  { %671 = vmatprep.mubr.bf16.mxu0 %v1909_v57  ;;  %799 = vmatprep.mubr.bf16.mxu1 %v1911_v58 }
  0xae   :  { %672 = vmatmul.mubr.bf16.gmra.mxu0 %v1913_v59  ;;  %800 = vmatmul.mubr.bf16.gmra.mxu1 %v1914_v60 }
  0xaf   :  { %679 = vmatprep.mubr.bf16.mxu0 %v1915_v61  ;;  %807 = vmatprep.mubr.bf16.mxu1 %v1917_v62 }
  0xb6   :  { %680 = vmatmul.mubr.bf16.gmra.mxu0 %v1919_v63  ;;  %808 = vmatmul.mubr.bf16.gmra.mxu1 %v1920_v0 }
  0xb7   :  { %687 = vmatprep.mubr.bf16.mxu0 %v1921_v1  ;;  %815 = vmatprep.mubr.bf16.mxu1 %v1923_v2 }
  0xbe   :  { %688 = vmatmul.mubr.bf16.gmra.mxu0 %v1925_v3  ;;  %816 = vmatmul.mubr.bf16.gmra.mxu1 %v1926_v4 }
  0xbf   :  { %695 = vmatprep.mubr.bf16.mxu0 %v1927_v5  ;;  %823 = vmatprep.mubr.bf16.mxu1 %v1929_v6 }
  0xc6   :  { %696 = vmatmul.mubr.bf16.gmra.mxu0 %v1931_v7  ;;  %824 = vmatmul.mubr.bf16.gmra.mxu1 %v1932_v8 }
  0xc7   :  { %703 = vmatprep.mubr.bf16.mxu0 %v1933_v9  ;;  %831 = vmatprep.mubr.bf16.mxu1 %v1935_v10 }
  0xce   :  { %704 = vmatmul.mubr.bf16.gmra.mxu0 %v1937_v11  ;;  %832 = vmatmul.mubr.bf16.gmra.mxu1 %v1938_v12 }
  0xcf   :  { %711 = vmatprep.mubr.bf16.mxu0 %v1939_v13  ;;  %839 = vmatprep.mubr.bf16.mxu1 %v1941_v14 }
  0xd6   :  { %712 = vmatmul.mubr.bf16.gmra.mxu0 %v1943_v15  ;;  %840 = vmatmul.mubr.bf16.gmra.mxu1 %v1944_v16 }
 0x11e   :  { %v593_v18 = vpop.f32.mrf.mxu0  ;;  %v721_v19 = vpop.f32.mrf.mxu1 }
 0x11f   :  { %v855_v20 = vmul.f32 %v2088_v17, %v593_v18  ;;  %v887_v22 = vmul.f32 %v2088_v17, %v721_v19 }
 0x120   :  { %v595_v23 = vpop.f32.mrf.mxu0  ;;  %v723_v24 = vpop.f32.mrf.mxu1 }
 0x121   :  { %v926_v25 = vadd.f32 %v2094_v21, %v855_v20  ;;  %v958_v26 = vadd.f32 %v2094_v21, %v887_v22 }
 0x122   :  { %v596_v27 = vpop.f32.mrf.mxu0  ;;  %v724_v28 = vpop.f32.mrf.mxu1 }
 0x123   :  { %v856_v29 = vmul.f32 %v2088_v17, %v596_v27  ;;  %v888_v30 = vmul.f32 %v2088_v17, %v724_v28  ;;  %v990_v35 = vmax.f32 %v926_v25, 0.0  ;;  %v1022_v36 = vmax.f32 %v958_v26, 0.0 }
 0x124   :  { %v598_v31 = vpop.f32.mrf.mxu0  ;;  %v726_v32 = vpop.f32.mrf.mxu1 }
 0x125   :  { %v927_v33 = vadd.f32 %v2094_v21, %v856_v29  ;;  %v959_v34 = vadd.f32 %v2094_v21, %v888_v30 }
 0x126   :  { %v601_v37 = vpop.f32.mrf.mxu0  ;;  %v729_v38 = vpop.f32.mrf.mxu1 }
 0x127   :  { %v991_v39 = vmax.f32 %v927_v33, 0.0  ;;  %v1023_v40 = vmax.f32 %v959_v34, 0.0  ;;  %v857_v41 = vmul.f32 %v2088_v17, %v601_v37  ;;  %v889_v42 = vmul.f32 %v2088_v17, %v729_v38 }
 0x128   :  { %v603_v43 = vpop.f32.mrf.mxu0  ;;  %v731_v44 = vpop.f32.mrf.mxu1 }
 0x129   :  { %v1605_v45 = vpack.c.bf16 %v991_v39, %v990_v35  ;;  %v1685_v46 = vpack.c.bf16 %v1023_v40, %v1022_v36  ;;  %v928_v47 = vadd.f32 %v2094_v21, %v857_v41  ;;  %v960_v48 = vadd.f32 %v2094_v21, %v889_v42 }
 0x12a   :  { %v604_v49 = vpop.f32.mrf.mxu0  ;;  %v732_v50 = vpop.f32.mrf.mxu1 }
 0x12b   :  { %1606 = vst [vmem:[#allocation7] sm:$0xff] %v1605_v45   ;;  %1777 = vst [vmem:[#allocation7 + $0x80] sm:$0xff] %v1685_v46   ;;  %v858_v51 = vmul.f32 %v2088_v17, %v604_v49  ;;  %v890_v52 = vmul.f32 %v2088_v17, %v732_v50  ;;  %v992_v57 = vmax.f32 %v928_v47, 0.0  ;;  %v1024_v58 = vmax.f32 %v960_v48, 0.0 }
 0x12c   :  { %v606_v53 = vpop.f32.mrf.mxu0  ;;  %v734_v54 = vpop.f32.mrf.mxu1 }
 0x12d   :  { %v929_v55 = vadd.f32 %v2094_v21, %v858_v51  ;;  %v961_v56 = vadd.f32 %v2094_v21, %v890_v52 }
 0x12e   :  { %v609_v59 = vpop.f32.mrf.mxu0  ;;  %v737_v60 = vpop.f32.mrf.mxu1 }
 0x12f   :  { %v993_v61 = vmax.f32 %v929_v55, 0.0  ;;  %v1025_v62 = vmax.f32 %v961_v56, 0.0  ;;  %v859_v63 = vmul.f32 %v2088_v17, %v609_v59  ;;  %v891_v0 = vmul.f32 %v2088_v17, %v737_v60 }
 0x130   :  { %v611_v1 = vpop.f32.mrf.mxu0  ;;  %v739_v2 = vpop.f32.mrf.mxu1 }
 0x131   :  { %v1610_v3 = vpack.c.bf16 %v993_v61, %v992_v57  ;;  %v1690_v4 = vpack.c.bf16 %v1025_v62, %v1024_v58  ;;  %v930_v5 = vadd.f32 %v2094_v21, %v859_v63  ;;  %v962_v6 = vadd.f32 %v2094_v21, %v891_v0 }
 0x132   :  { %v612_v7 = vpop.f32.mrf.mxu0  ;;  %v740_v8 = vpop.f32.mrf.mxu1 }
 0x133   :  { %1762 = vst [vmem:[#allocation7 + $0x8] sm:$0xff] %v1610_v3   ;;  %1778 = vst [vmem:[#allocation7 + $0x88] sm:$0xff] %v1690_v4   ;;  %v860_v9 = vmul.f32 %v2088_v17, %v612_v7  ;;  %v892_v10 = vmul.f32 %v2088_v17, %v740_v8  ;;  %v994_v15 = vmax.f32 %v930_v5, 0.0  ;;  %v1026_v16 = vmax.f32 %v962_v6, 0.0 }
 0x134   :  { %v614_v11 = vpop.f32.mrf.mxu0  ;;  %v742_v12 = vpop.f32.mrf.mxu1 }
 0x135   :  { %v931_v13 = vadd.f32 %v2094_v21, %v860_v9  ;;  %v963_v14 = vadd.f32 %v2094_v21, %v892_v10 }
 0x136   :  { %v617_v18 = vpop.f32.mrf.mxu0  ;;  %v745_v19 = vpop.f32.mrf.mxu1 }
 0x137   :  { %v995_v20 = vmax.f32 %v931_v13, 0.0  ;;  %v1027_v22 = vmax.f32 %v963_v14, 0.0  ;;  %v861_v23 = vmul.f32 %v2088_v17, %v617_v18  ;;  %v893_v24 = vmul.f32 %v2088_v17, %v745_v19 }
 0x138   :  { %v619_v25 = vpop.f32.mrf.mxu0  ;;  %v747_v26 = vpop.f32.mrf.mxu1 }
 0x139   :  { %v1615_v27 = vpack.c.bf16 %v995_v20, %v994_v15  ;;  %v1695_v28 = vpack.c.bf16 %v1027_v22, %v1026_v16  ;;  %v932_v29 = vadd.f32 %v2094_v21, %v861_v23  ;;  %v964_v30 = vadd.f32 %v2094_v21, %v893_v24 }
 0x13a   :  { %v620_v31 = vpop.f32.mrf.mxu0  ;;  %v748_v32 = vpop.f32.mrf.mxu1 }
 0x13b   :  { %1763 = vst [vmem:[#allocation7 + $0x10] sm:$0xff] %v1615_v27   ;;  %1779 = vst [vmem:[#allocation7 + $0x90] sm:$0xff] %v1695_v28   ;;  %v862_v33 = vmul.f32 %v2088_v17, %v620_v31  ;;  %v894_v34 = vmul.f32 %v2088_v17, %v748_v32  ;;  %v996_v39 = vmax.f32 %v932_v29, 0.0  ;;  %v1028_v40 = vmax.f32 %v964_v30, 0.0 }
 0x13c   :  { %v622_v35 = vpop.f32.mrf.mxu0  ;;  %v750_v36 = vpop.f32.mrf.mxu1 }
 0x13d   :  { %v933_v37 = vadd.f32 %v2094_v21, %v862_v33  ;;  %v965_v38 = vadd.f32 %v2094_v21, %v894_v34 }
 0x13e   :  { %v625_v41 = vpop.f32.mrf.mxu0  ;;  %v753_v42 = vpop.f32.mrf.mxu1 }
 0x13f   :  { %v997_v43 = vmax.f32 %v933_v37, 0.0  ;;  %v1029_v44 = vmax.f32 %v965_v38, 0.0  ;;  %v863_v45 = vmul.f32 %v2088_v17, %v625_v41  ;;  %v895_v46 = vmul.f32 %v2088_v17, %v753_v42 }
 0x140   :  { %v627_v47 = vpop.f32.mrf.mxu0  ;;  %v755_v48 = vpop.f32.mrf.mxu1 }
 0x141   :  { %v1620_v49 = vpack.c.bf16 %v997_v43, %v996_v39  ;;  %v1700_v50 = vpack.c.bf16 %v1029_v44, %v1028_v40  ;;  %v934_v51 = vadd.f32 %v2094_v21, %v863_v45  ;;  %v966_v52 = vadd.f32 %v2094_v21, %v895_v46 }
 0x142   :  { %v628_v53 = vpop.f32.mrf.mxu0  ;;  %v756_v54 = vpop.f32.mrf.mxu1 }
 0x143   :  { %1764 = vst [vmem:[#allocation7 + $0x18] sm:$0xff] %v1620_v49   ;;  %1780 = vst [vmem:[#allocation7 + $0x98] sm:$0xff] %v1700_v50   ;;  %v864_v55 = vmul.f32 %v2088_v17, %v628_v53  ;;  %v896_v56 = vmul.f32 %v2088_v17, %v756_v54  ;;  %v998_v61 = vmax.f32 %v934_v51, 0.0  ;;  %v1030_v62 = vmax.f32 %v966_v52, 0.0 }
 0x144   :  { %v630_v57 = vpop.f32.mrf.mxu0  ;;  %v758_v58 = vpop.f32.mrf.mxu1 }
 0x145   :  { %v935_v59 = vadd.f32 %v2094_v21, %v864_v55  ;;  %v967_v60 = vadd.f32 %v2094_v21, %v896_v56 }
 0x146   :  { %v633_v63 = vpop.f32.mrf.mxu0  ;;  %v761_v0 = vpop.f32.mrf.mxu1 }
 0x147   :  { %v999_v1 = vmax.f32 %v935_v59, 0.0  ;;  %v1031_v2 = vmax.f32 %v967_v60, 0.0  ;;  %v865_v3 = vmul.f32 %v2088_v17, %v633_v63  ;;  %v897_v4 = vmul.f32 %v2088_v17, %v761_v0 }
 0x148   :  { %v635_v5 = vpop.f32.mrf.mxu0  ;;  %v763_v6 = vpop.f32.mrf.mxu1 }
 0x149   :  { %v1625_v7 = vpack.c.bf16 %v999_v1, %v998_v61  ;;  %v1705_v8 = vpack.c.bf16 %v1031_v2, %v1030_v62  ;;  %v936_v9 = vadd.f32 %v2094_v21, %v865_v3  ;;  %v968_v10 = vadd.f32 %v2094_v21, %v897_v4 }
 0x14a   :  { %v636_v11 = vpop.f32.mrf.mxu0  ;;  %v764_v12 = vpop.f32.mrf.mxu1 }
 0x14b   :  { %1765 = vst [vmem:[#allocation7 + $0x20] sm:$0xff] %v1625_v7   ;;  %1781 = vst [vmem:[#allocation7 + $0xa0] sm:$0xff] %v1705_v8   ;;  %v866_v13 = vmul.f32 %v2088_v17, %v636_v11  ;;  %v898_v14 = vmul.f32 %v2088_v17, %v764_v12  ;;  %v1000_v20 = vmax.f32 %v936_v9, 0.0  ;;  %v1032_v22 = vmax.f32 %v968_v10, 0.0 }
 0x14c   :  { %v638_v15 = vpop.f32.mrf.mxu0  ;;  %v766_v16 = vpop.f32.mrf.mxu1 }
 0x14d   :  { %v937_v18 = vadd.f32 %v2094_v21, %v866_v13  ;;  %v969_v19 = vadd.f32 %v2094_v21, %v898_v14 }
 0x14e   :  { %v641_v23 = vpop.f32.mrf.mxu0  ;;  %v769_v24 = vpop.f32.mrf.mxu1 }
 0x14f   :  { %v1001_v25 = vmax.f32 %v937_v18, 0.0  ;;  %v1033_v26 = vmax.f32 %v969_v19, 0.0  ;;  %v867_v27 = vmul.f32 %v2088_v17, %v641_v23  ;;  %v899_v28 = vmul.f32 %v2088_v17, %v769_v24 }
 0x150   :  { %v643_v29 = vpop.f32.mrf.mxu0  ;;  %v771_v30 = vpop.f32.mrf.mxu1 }
 0x151   :  { %v1630_v31 = vpack.c.bf16 %v1001_v25, %v1000_v20  ;;  %v1710_v32 = vpack.c.bf16 %v1033_v26, %v1032_v22  ;;  %v938_v33 = vadd.f32 %v2094_v21, %v867_v27  ;;  %v970_v34 = vadd.f32 %v2094_v21, %v899_v28 }
 0x152   :  { %v644_v35 = vpop.f32.mrf.mxu0  ;;  %v772_v36 = vpop.f32.mrf.mxu1 }
 0x153   :  { %1766 = vst [vmem:[#allocation7 + $0x28] sm:$0xff] %v1630_v31   ;;  %1782 = vst [vmem:[#allocation7 + $0xa8] sm:$0xff] %v1710_v32   ;;  %v868_v37 = vmul.f32 %v2088_v17, %v644_v35  ;;  %v900_v38 = vmul.f32 %v2088_v17, %v772_v36  ;;  %v1002_v43 = vmax.f32 %v938_v33, 0.0  ;;  %v1034_v44 = vmax.f32 %v970_v34, 0.0 }
 0x154   :  { %v646_v39 = vpop.f32.mrf.mxu0  ;;  %v774_v40 = vpop.f32.mrf.mxu1 }
 0x155   :  { %v939_v41 = vadd.f32 %v2094_v21, %v868_v37  ;;  %v971_v42 = vadd.f32 %v2094_v21, %v900_v38 }
 0x156   :  { %v649_v45 = vpop.f32.mrf.mxu0  ;;  %v777_v46 = vpop.f32.mrf.mxu1 }
 0x157   :  { %v1003_v47 = vmax.f32 %v939_v41, 0.0  ;;  %v1035_v48 = vmax.f32 %v971_v42, 0.0  ;;  %v869_v49 = vmul.f32 %v2088_v17, %v649_v45  ;;  %v901_v50 = vmul.f32 %v2088_v17, %v777_v46 }
 0x158   :  { %v651_v51 = vpop.f32.mrf.mxu0  ;;  %v779_v52 = vpop.f32.mrf.mxu1 }
 0x159   :  { %v1635_v53 = vpack.c.bf16 %v1003_v47, %v1002_v43  ;;  %v1715_v54 = vpack.c.bf16 %v1035_v48, %v1034_v44  ;;  %v940_v55 = vadd.f32 %v2094_v21, %v869_v49  ;;  %v972_v56 = vadd.f32 %v2094_v21, %v901_v50 }
 0x15a   :  { %v652_v57 = vpop.f32.mrf.mxu0  ;;  %v780_v58 = vpop.f32.mrf.mxu1 }
 0x15b   :  { %1767 = vst [vmem:[#allocation7 + $0x30] sm:$0xff] %v1635_v53   ;;  %1783 = vst [vmem:[#allocation7 + $0xb0] sm:$0xff] %v1715_v54   ;;  %v870_v59 = vmul.f32 %v2088_v17, %v652_v57  ;;  %v902_v60 = vmul.f32 %v2088_v17, %v780_v58  ;;  %v1004_v1 = vmax.f32 %v940_v55, 0.0  ;;  %v1036_v2 = vmax.f32 %v972_v56, 0.0 }
 0x15c   :  { %v654_v61 = vpop.f32.mrf.mxu0  ;;  %v782_v62 = vpop.f32.mrf.mxu1 }
 0x15d   :  { %v941_v63 = vadd.f32 %v2094_v21, %v870_v59  ;;  %v973_v0 = vadd.f32 %v2094_v21, %v902_v60 }
 0x15e   :  { %v657_v3 = vpop.f32.mrf.mxu0  ;;  %v785_v4 = vpop.f32.mrf.mxu1 }
 0x15f   :  { %v1005_v5 = vmax.f32 %v941_v63, 0.0  ;;  %v1037_v6 = vmax.f32 %v973_v0, 0.0  ;;  %v871_v7 = vmul.f32 %v2088_v17, %v657_v3  ;;  %v903_v8 = vmul.f32 %v2088_v17, %v785_v4 }
 0x160   :  { %v659_v9 = vpop.f32.mrf.mxu0  ;;  %v787_v10 = vpop.f32.mrf.mxu1 }
 0x161   :  { %v1640_v11 = vpack.c.bf16 %v1005_v5, %v1004_v1  ;;  %v1720_v12 = vpack.c.bf16 %v1037_v6, %v1036_v2  ;;  %v942_v13 = vadd.f32 %v2094_v21, %v871_v7  ;;  %v974_v14 = vadd.f32 %v2094_v21, %v903_v8 }
 0x162   :  { %v660_v15 = vpop.f32.mrf.mxu0  ;;  %v788_v16 = vpop.f32.mrf.mxu1 }
 0x163   :  { %1768 = vst [vmem:[#allocation7 + $0x38] sm:$0xff] %v1640_v11   ;;  %1784 = vst [vmem:[#allocation7 + $0xb8] sm:$0xff] %v1720_v12   ;;  %v872_v18 = vmul.f32 %v2088_v17, %v660_v15  ;;  %v904_v19 = vmul.f32 %v2088_v17, %v788_v16  ;;  %v1006_v25 = vmax.f32 %v942_v13, 0.0  ;;  %v1038_v26 = vmax.f32 %v974_v14, 0.0 }
 0x164   :  { %v662_v20 = vpop.f32.mrf.mxu0  ;;  %v790_v22 = vpop.f32.mrf.mxu1 }
 0x165   :  { %v943_v23 = vadd.f32 %v2094_v21, %v872_v18  ;;  %v975_v24 = vadd.f32 %v2094_v21, %v904_v19 }
 0x166   :  { %v665_v27 = vpop.f32.mrf.mxu0  ;;  %v793_v28 = vpop.f32.mrf.mxu1 }
 0x167   :  { %v1007_v29 = vmax.f32 %v943_v23, 0.0  ;;  %v1039_v30 = vmax.f32 %v975_v24, 0.0  ;;  %v873_v31 = vmul.f32 %v2088_v17, %v665_v27  ;;  %v905_v32 = vmul.f32 %v2088_v17, %v793_v28 }
 0x168   :  { %v667_v33 = vpop.f32.mrf.mxu0  ;;  %v795_v34 = vpop.f32.mrf.mxu1 }
 0x169   :  { %v1645_v35 = vpack.c.bf16 %v1007_v29, %v1006_v25  ;;  %v1725_v36 = vpack.c.bf16 %v1039_v30, %v1038_v26  ;;  %v944_v37 = vadd.f32 %v2094_v21, %v873_v31  ;;  %v976_v38 = vadd.f32 %v2094_v21, %v905_v32 }
 0x16a   :  { %v668_v39 = vpop.f32.mrf.mxu0  ;;  %v796_v40 = vpop.f32.mrf.mxu1 }
 0x16b   :  { %1769 = vst [vmem:[#allocation7 + $0x40] sm:$0xff] %v1645_v35   ;;  %1785 = vst [vmem:[#allocation7 + $0xc0] sm:$0xff] %v1725_v36   ;;  %v874_v41 = vmul.f32 %v2088_v17, %v668_v39  ;;  %v906_v42 = vmul.f32 %v2088_v17, %v796_v40  ;;  %v1008_v47 = vmax.f32 %v944_v37, 0.0  ;;  %v1040_v48 = vmax.f32 %v976_v38, 0.0 }
 0x16c   :  { %v670_v43 = vpop.f32.mrf.mxu0  ;;  %v798_v44 = vpop.f32.mrf.mxu1 }
 0x16d   :  { %v945_v45 = vadd.f32 %v2094_v21, %v874_v41  ;;  %v977_v46 = vadd.f32 %v2094_v21, %v906_v42 }
 0x16e   :  { %v673_v49 = vpop.f32.mrf.mxu0  ;;  %v801_v50 = vpop.f32.mrf.mxu1 }
 0x16f   :  { %v1009_v51 = vmax.f32 %v945_v45, 0.0  ;;  %v1041_v52 = vmax.f32 %v977_v46, 0.0  ;;  %v875_v53 = vmul.f32 %v2088_v17, %v673_v49  ;;  %v907_v54 = vmul.f32 %v2088_v17, %v801_v50 }
 0x170   :  { %v675_v55 = vpop.f32.mrf.mxu0  ;;  %v803_v56 = vpop.f32.mrf.mxu1 }
 0x171   :  { %v1650_v57 = vpack.c.bf16 %v1009_v51, %v1008_v47  ;;  %v1730_v58 = vpack.c.bf16 %v1041_v52, %v1040_v48  ;;  %v946_v59 = vadd.f32 %v2094_v21, %v875_v53  ;;  %v978_v60 = vadd.f32 %v2094_v21, %v907_v54 }
 0x172   :  { %v676_v61 = vpop.f32.mrf.mxu0  ;;  %v804_v62 = vpop.f32.mrf.mxu1 }
 0x173   :  { %1770 = vst [vmem:[#allocation7 + $0x48] sm:$0xff] %v1650_v57   ;;  %1786 = vst [vmem:[#allocation7 + $0xc8] sm:$0xff] %v1730_v58   ;;  %v876_v63 = vmul.f32 %v2088_v17, %v676_v61  ;;  %v908_v0 = vmul.f32 %v2088_v17, %v804_v62  ;;  %v1010_v5 = vmax.f32 %v946_v59, 0.0  ;;  %v1042_v6 = vmax.f32 %v978_v60, 0.0 }
 0x174   :  { %v678_v1 = vpop.f32.mrf.mxu0  ;;  %v806_v2 = vpop.f32.mrf.mxu1 }
 0x175   :  { %v947_v3 = vadd.f32 %v2094_v21, %v876_v63  ;;  %v979_v4 = vadd.f32 %v2094_v21, %v908_v0 }
 0x176   :  { %v681_v7 = vpop.f32.mrf.mxu0  ;;  %v809_v8 = vpop.f32.mrf.mxu1 }
 0x177   :  { %v1011_v9 = vmax.f32 %v947_v3, 0.0  ;;  %v1043_v10 = vmax.f32 %v979_v4, 0.0  ;;  %v877_v11 = vmul.f32 %v2088_v17, %v681_v7  ;;  %v909_v12 = vmul.f32 %v2088_v17, %v809_v8 }
 0x178   :  { %v683_v13 = vpop.f32.mrf.mxu0  ;;  %v811_v14 = vpop.f32.mrf.mxu1 }
 0x179   :  { %v1655_v15 = vpack.c.bf16 %v1011_v9, %v1010_v5  ;;  %v1735_v16 = vpack.c.bf16 %v1043_v10, %v1042_v6  ;;  %v948_v18 = vadd.f32 %v2094_v21, %v877_v11  ;;  %v980_v19 = vadd.f32 %v2094_v21, %v909_v12 }
 0x17a   :  { %v684_v20 = vpop.f32.mrf.mxu0  ;;  %v812_v22 = vpop.f32.mrf.mxu1 }
 0x17b   :  { %1771 = vst [vmem:[#allocation7 + $0x50] sm:$0xff] %v1655_v15   ;;  %1787 = vst [vmem:[#allocation7 + $0xd0] sm:$0xff] %v1735_v16   ;;  %v878_v23 = vmul.f32 %v2088_v17, %v684_v20  ;;  %v910_v24 = vmul.f32 %v2088_v17, %v812_v22  ;;  %v1012_v29 = vmax.f32 %v948_v18, 0.0  ;;  %v1044_v30 = vmax.f32 %v980_v19, 0.0 }
 0x17c   :  { %v686_v25 = vpop.f32.mrf.mxu0  ;;  %v814_v26 = vpop.f32.mrf.mxu1 }
 0x17d   :  { %v949_v27 = vadd.f32 %v2094_v21, %v878_v23  ;;  %v981_v28 = vadd.f32 %v2094_v21, %v910_v24 }
 0x17e   :  { %v689_v31 = vpop.f32.mrf.mxu0  ;;  %v817_v32 = vpop.f32.mrf.mxu1 }
 0x17f   :  { %v1013_v33 = vmax.f32 %v949_v27, 0.0  ;;  %v1045_v34 = vmax.f32 %v981_v28, 0.0  ;;  %v879_v35 = vmul.f32 %v2088_v17, %v689_v31  ;;  %v911_v36 = vmul.f32 %v2088_v17, %v817_v32 }
 0x180   :  { %v691_v37 = vpop.f32.mrf.mxu0  ;;  %v819_v38 = vpop.f32.mrf.mxu1 }
 0x181   :  { %v1660_v39 = vpack.c.bf16 %v1013_v33, %v1012_v29  ;;  %v1740_v40 = vpack.c.bf16 %v1045_v34, %v1044_v30  ;;  %v950_v41 = vadd.f32 %v2094_v21, %v879_v35  ;;  %v982_v42 = vadd.f32 %v2094_v21, %v911_v36 }
 0x182   :  { %v692_v43 = vpop.f32.mrf.mxu0  ;;  %v820_v44 = vpop.f32.mrf.mxu1 }
 0x183   :  { %1772 = vst [vmem:[#allocation7 + $0x58] sm:$0xff] %v1660_v39   ;;  %1788 = vst [vmem:[#allocation7 + $0xd8] sm:$0xff] %v1740_v40   ;;  %v880_v45 = vmul.f32 %v2088_v17, %v692_v43  ;;  %v912_v46 = vmul.f32 %v2088_v17, %v820_v44  ;;  %v1014_v51 = vmax.f32 %v950_v41, 0.0  ;;  %v1046_v52 = vmax.f32 %v982_v42, 0.0 }
 0x184   :  { %v694_v47 = vpop.f32.mrf.mxu0  ;;  %v822_v48 = vpop.f32.mrf.mxu1 }
 0x185   :  { %v951_v49 = vadd.f32 %v2094_v21, %v880_v45  ;;  %v983_v50 = vadd.f32 %v2094_v21, %v912_v46 }
 0x186   :  { %v697_v53 = vpop.f32.mrf.mxu0  ;;  %v825_v54 = vpop.f32.mrf.mxu1 }
 0x187   :  { %v1015_v55 = vmax.f32 %v951_v49, 0.0  ;;  %v1047_v56 = vmax.f32 %v983_v50, 0.0  ;;  %v881_v57 = vmul.f32 %v2088_v17, %v697_v53  ;;  %v913_v58 = vmul.f32 %v2088_v17, %v825_v54 }
 0x188   :  { %v699_v59 = vpop.f32.mrf.mxu0  ;;  %v827_v60 = vpop.f32.mrf.mxu1 }
 0x189   :  { %v1665_v61 = vpack.c.bf16 %v1015_v55, %v1014_v51  ;;  %v1745_v62 = vpack.c.bf16 %v1047_v56, %v1046_v52  ;;  %v952_v63 = vadd.f32 %v2094_v21, %v881_v57  ;;  %v984_v0 = vadd.f32 %v2094_v21, %v913_v58 }
 0x18a   :  { %v700_v1 = vpop.f32.mrf.mxu0  ;;  %v828_v2 = vpop.f32.mrf.mxu1 }
 0x18b   :  { %1773 = vst [vmem:[#allocation7 + $0x60] sm:$0xff] %v1665_v61   ;;  %1789 = vst [vmem:[#allocation7 + $0xe0] sm:$0xff] %v1745_v62   ;;  %v882_v3 = vmul.f32 %v2088_v17, %v700_v1  ;;  %v914_v4 = vmul.f32 %v2088_v17, %v828_v2  ;;  %v1016_v9 = vmax.f32 %v952_v63, 0.0  ;;  %v1048_v10 = vmax.f32 %v984_v0, 0.0 }
 0x18c   :  { %v702_v5 = vpop.f32.mrf.mxu0  ;;  %v830_v6 = vpop.f32.mrf.mxu1 }
 0x18d   :  { %v953_v7 = vadd.f32 %v2094_v21, %v882_v3  ;;  %v985_v8 = vadd.f32 %v2094_v21, %v914_v4 }
 0x18e   :  { %v705_v11 = vpop.f32.mrf.mxu0  ;;  %v833_v12 = vpop.f32.mrf.mxu1 }
 0x18f   :  { %v1017_v13 = vmax.f32 %v953_v7, 0.0  ;;  %v1049_v14 = vmax.f32 %v985_v8, 0.0  ;;  %v883_v15 = vmul.f32 %v2088_v17, %v705_v11  ;;  %v915_v16 = vmul.f32 %v2088_v17, %v833_v12 }
 0x190   :  { %v707_v18 = vpop.f32.mrf.mxu0  ;;  %v835_v19 = vpop.f32.mrf.mxu1 }
 0x191   :  { %v1670_v20 = vpack.c.bf16 %v1017_v13, %v1016_v9  ;;  %v1750_v22 = vpack.c.bf16 %v1049_v14, %v1048_v10  ;;  %v954_v23 = vadd.f32 %v2094_v21, %v883_v15  ;;  %v986_v24 = vadd.f32 %v2094_v21, %v915_v16 }
 0x192   :  { %v708_v25 = vpop.f32.mrf.mxu0  ;;  %v836_v26 = vpop.f32.mrf.mxu1 }
 0x193   :  { %1774 = vst [vmem:[#allocation7 + $0x68] sm:$0xff] %v1670_v20   ;;  %1790 = vst [vmem:[#allocation7 + $0xe8] sm:$0xff] %v1750_v22   ;;  %v884_v27 = vmul.f32 %v2088_v17, %v708_v25  ;;  %v916_v28 = vmul.f32 %v2088_v17, %v836_v26  ;;  %v1018_v33 = vmax.f32 %v954_v23, 0.0  ;;  %v1050_v34 = vmax.f32 %v986_v24, 0.0 }
 0x194   :  { %v710_v29 = vpop.f32.mrf.mxu0  ;;  %v838_v30 = vpop.f32.mrf.mxu1 }
 0x195   :  { %v955_v31 = vadd.f32 %v2094_v21, %v884_v27  ;;  %v987_v32 = vadd.f32 %v2094_v21, %v916_v28 }
 0x196   :  { %v713_v35 = vpop.f32.mrf.mxu0  ;;  %v841_v36 = vpop.f32.mrf.mxu1 }
 0x197   :  { %v1019_v37 = vmax.f32 %v955_v31, 0.0  ;;  %v1051_v38 = vmax.f32 %v987_v32, 0.0  ;;  %v885_v39 = vmul.f32 %v2088_v17, %v713_v35  ;;  %v917_v40 = vmul.f32 %v2088_v17, %v841_v36 }
 0x198   :  { %v715_v41 = vpop.f32.mrf.mxu0  ;;  %v843_v42 = vpop.f32.mrf.mxu1 }
 0x199   :  { %v1675_v43 = vpack.c.bf16 %v1019_v37, %v1018_v33  ;;  %v1755_v44 = vpack.c.bf16 %v1051_v38, %v1050_v34  ;;  %v956_v47 = vadd.f32 %v2094_v21, %v885_v39  ;;  %v988_v48 = vadd.f32 %v2094_v21, %v917_v40 }
 0x19a   :  { %v716_v45 = vpop.f32.mrf.mxu0  ;;  %v844_v46 = vpop.f32.mrf.mxu1 }
 0x19b   :  { %1775 = vst [vmem:[#allocation7 + $0x70] sm:$0xff] %v1675_v43   ;;  %1791 = vst [vmem:[#allocation7 + $0xf0] sm:$0xff] %v1755_v44   ;;  %v886_v49 = vmul.f32 %v2088_v17, %v716_v45  ;;  %v918_v50 = vmul.f32 %v2088_v17, %v844_v46  ;;  %v1020_v55 = vmax.f32 %v956_v47, 0.0  ;;  %v1052_v56 = vmax.f32 %v988_v48, 0.0 }
 0x19c   :  { %v718_v51 = vpop.f32.mrf.mxu0  ;;  %v846_v52 = vpop.f32.mrf.mxu1 }
 0x19d   :  { %v957_v53 = vadd.f32 %v2094_v21, %v886_v49  ;;  %v989_v54 = vadd.f32 %v2094_v21, %v918_v50 }
 0x19f   :  { %v1021_v57 = vmax.f32 %v957_v53, 0.0  ;;  %v1053_v58 = vmax.f32 %v989_v54, 0.0 }
 0x1a1   :  { %v1680_v59 = vpack.c.bf16 %v1021_v57, %v1020_v55  ;;  %v1760_v60 = vpack.c.bf16 %v1053_v58, %v1052_v56 }
 0x1a3   :  { %1776 = vst [vmem:[#allocation7 + $0x78] sm:$0xff] %v1680_v59   ;;  %1792 = vst [vmem:[#allocation7 + $0xf8] sm:$0xff] %v1760_v60  }
 0x1a4   :  { %1996 = shalt.err (!%p1993_p0)
}
 0x1a5   :  { %1385 = dma.vmem_to_hbm [thread:$0]  %s1380_s3, 4096, %s2233_s4, [#allocation4], %s2015_s25, %s2015_s25, %s2016_s26  }
 0x1a6   :  { %2009 = dma.done.wait [#allocation4], 4096  }
 0x1a7   :  { %2010 = vsyncadd [#allocation4], 4294963200 }
 0x1a8   :  { %1389 = vsyncpa [#allocation3], 1 }
 0x1a9   :  { %1390 = vsyncpa [#allocation6], 1 }
 0x1aa   :  { %1391 = vsyncpa [#allocation4], 1 }

</bundles_post_ra>
